<compile_context>
chip_gen: v6e
topology: v6e:2x2x1
jax: 0.10.0
libtpu: 0.0.40
codegen_flags: <defaults>
</compile_context>

<pallas_src>
import functools

import jax
import jax.numpy as jnp
from jax.experimental import pallas as pl
from jax.experimental.pallas import tpu as pltpu


def _softplus_kernel(x_ref, o_ref, *, beta, threshold):
    x = x_ref[...]
    # exp/log1p run on the EUP in f32; skip the cast if input is already f32.
    xf = x if x.dtype == jnp.float32 else x.astype(jnp.float32)
    if beta == 1.0:
        # Specialized path: no beta multiplies (2 fewer VALU ops / element).
        sp = jnp.maximum(xf, 0.0) + jnp.log1p(jnp.exp(-jnp.abs(xf)))
    else:
        z = beta * xf
        sp = (1.0 / beta) * (jnp.maximum(z, 0.0) + jnp.log1p(jnp.exp(-jnp.abs(z))))
    # Module semantics: revert to linear when x > threshold (not beta*x).
    o_ref[...] = jnp.where(xf > threshold, xf, sp).astype(o_ref.dtype)


def _softplus_jnp(x, beta, threshold):
    """Stable pure-jnp fallback (same math) for ragged element counts."""
    xf = x.astype(jnp.float32)
    z = beta * xf
    sp = (1.0 / beta) * (jnp.maximum(z, 0.0) + jnp.log1p(jnp.exp(-jnp.abs(z))))
    return jnp.where(xf > threshold, xf, sp).astype(x.dtype)


def _pick_tile_bytes():
    """Per-buffer tile bytes + explicit vmem limit, chosen per TPU generation."""
    try:
        kind = jax.devices()[0].device_kind.lower()
    except Exception:
        kind = ""
    if ("v6" in kind) or ("v7" in kind):
        # 4 MiB/buffer: 2x in + 2x out = 16 MiB, inside the 32 MiB limit we set.
        return 4 * 1024 * 1024, 32 * 1024 * 1024
    # v5e (16 MiB default scoped VMEM) and unknown chips: stay at 2 MiB.
    return 2 * 1024 * 1024, None


def softplus(x, beta=1.0, threshold=20.0):
    """Elementwise softplus matching the reference PyTorch module's forward."""
    orig_shape = x.shape
    orig_dtype = x.dtype
    n = x.size

    if n == 0:
        return x

    # Ragged sizes: no pad+slice (two extra HBM passes) — plain jnp fallback.
    if n % 128 != 0:
        return _softplus_jnp(x, float(beta), float(threshold))

    # Widest lane count that divides the element count (lane-dense output).
    lanes = 128
    for cand in (1024, 512, 256, 128):
        if n % cand == 0:
            lanes = cand
            break

    rows = n // lanes
    x2d = jnp.ravel(x).reshape(rows, lanes)   # contiguous reshape: free

    target_tile_bytes, vmem_limit = _pick_tile_bytes()
    bytes_per_elem = jnp.dtype(orig_dtype).itemsize
    tr = max(16, target_tile_bytes // (lanes * bytes_per_elem))
    tr = (tr // 16) * 16                      # 16-aligned: bf16-safe sublane packing
    if rows <= tr:
        tr = rows                             # single block covering full extent
    grid = (pl.cdiv(rows, tr),)               # partial last block is masked

    kernel = functools.partial(
        _softplus_kernel, beta=float(beta), threshold=float(threshold)
    )

    compiler_kwargs = dict(dimension_semantics=("parallel",))
    if vmem_limit is not None:
        compiler_kwargs["vmem_limit_bytes"] = vmem_limit

    out2d = pl.pallas_call(
        kernel,
        out_shape=jax.ShapeDtypeStruct((rows, lanes), orig_dtype),
        grid_spec=pltpu.PrefetchScalarGridSpec(
            num_scalar_prefetch=0,
            grid=grid,
            in_specs=[pl.BlockSpec((tr, lanes), lambda i: (i, 0))],
            out_specs=pl.BlockSpec((tr, lanes), lambda i: (i, 0)),
        ),
        compiler_params=pltpu.CompilerParams(**compiler_kwargs),
    )(x2d)

    return out2d.reshape(orig_shape)


def softplus_ref(x, beta=1.0, threshold=20.0):
    # Stable reference with the module's semantics (x > threshold select).
    xf = x.astype(jnp.float32)
    z = beta * xf
    sp = (1.0 / beta) * (jnp.maximum(z, 0.0) + jnp.log1p(jnp.exp(-jnp.abs(z))))
    return jnp.where(xf > threshold, xf, sp).astype(x.dtype)


if __name__ == "__main__":
    key = jax.random.PRNGKey(0)
    # NCHW like PyTorch; scale so some values exceed the threshold branch.
    x = jax.random.normal(key, (2, 4, 16, 16), dtype=jnp.float32) * 15.0

    beta, threshold = 1.0, 20.0
    out = softplus(x, beta=beta, threshold=threshold)
    out = jax.block_until_ready(out)

    ref = softplus_ref(x, beta=beta, threshold=threshold)
    assert out.shape == x.shape and out.dtype == x.dtype
    assert jnp.allclose(out, ref, atol=1e-5, rtol=1e-5), "mismatch vs reference"

    print("KERNEL_OK")
</pallas_src>

<mosaic_0001>
module attributes {stable_mosaic.version = 11 : i64} {
  func.func @_softplus_kernel(%arg0: i32, %arg1: memref<2x1024xf32, #tpu.memory_space<vmem>>, %arg2: memref<2x1024xf32, #tpu.memory_space<vmem>>) attributes {dimension_semantics = [#tpu.dimension_semantics<parallel>], iteration_bounds = array<i64: 1>, scalar_prefetch = 0 : i64, scratch_operands = 0 : i64, tpu.core_type = #tpu.core_type<tc>, window_params = [{transform_indices = @transform_0, window_bounds = array<i64: 2, 1024>}, {transform_indices = @transform_1, window_bounds = array<i64: 2, 1024>}]} {
    %c0 = arith.constant 0 : index
    %c0_0 = arith.constant 0 : index
    %0 = vector.load %arg1[%c0, %c0_0] : memref<2x1024xf32, #tpu.memory_space<vmem>>, vector<2x1024xf32>
    %cst = arith.constant 0.000000e+00 : f32
    %1 = vector.broadcast %cst : f32 to vector<2x1024xf32>
    %2 = arith.maximumf %0, %1 : vector<2x1024xf32>
    %3 = math.absf %0 : vector<2x1024xf32>
    %cst_1 = arith.constant 0.000000e+00 : f32
    %4 = vector.broadcast %cst_1 : f32 to vector<2x1024xf32>
    %5 = arith.subf %4, %3 : vector<2x1024xf32>
    %6 = math.exp %5 : vector<2x1024xf32>
    %7 = math.log1p %6 : vector<2x1024xf32>
    %8 = arith.addf %2, %7 : vector<2x1024xf32>
    %cst_2 = arith.constant 2.000000e+01 : f32
    %9 = vector.broadcast %cst_2 : f32 to vector<2x1024xf32>
    %10 = arith.cmpf ogt, %0, %9 : vector<2x1024xf32>
    %11 = arith.select %10, %0, %8 : vector<2x1024xi1>, vector<2x1024xf32>
    %c0_3 = arith.constant 0 : index
    %c0_4 = arith.constant 0 : index
    %12 = vector.load %arg2[%c0_3, %c0_4] : memref<2x1024xf32, #tpu.memory_space<vmem>>, vector<2x1024xf32>
    tpu.vector_store %arg2[%c0_3, %c0_4], %11 {strides = array<i32>} : memref<2x1024xf32, #tpu.memory_space<vmem>>, vector<2x1024xf32>,
    return
  }
  func.func @transform_0(%arg0: i32) -> (i32, i32) {
    %c0_i32 = arith.constant 0 : i32
    %c0_i32_0 = arith.constant 0 : i32
    return %arg0, %c0_i32 : i32, i32
  }
  func.func @transform_1(%arg0: i32) -> (i32, i32) {
    %c0_i32 = arith.constant 0 : i32
    %c0_i32_0 = arith.constant 0 : i32
    return %arg0, %c0_i32 : i32, i32
  }
}

</mosaic_0001>

<bundles_post_ra>
// kernel: tpu_custom_call.1
= control target key start
LH: loop header
LB: loop body
LE: loop exit
PB: predicated region body
PF: predicated region fallthrough
CT: control target
= control target key end

     0   :  { %6 = vsyncpa [#allocation3], 0  ;;  %s146_s0 = inlined_call_operand.hbm [shape: f32[2,1024], index: 0, kind: input, shape index: {}]   ;;  %s147_s1 = inlined_call_operand.hbm [shape: f32[2,1024], index: 1, kind: output, shape index: {}]  }
   0x1   :  { %7 = vsyncpa [#allocation4], 0  ;;  %s128_s6 = smov [#allocation2]  }
   0x2   :  { %s14_s7 = sshll.u32 %s128_s6, 4  ;;  %s15_s7 = int_to_ptr.vmem [resolvable:$true] %s14_s7 }
   0x3   :  { %s92_s8 = scalar_lea.vmem %s15_s7, 256  ;;  %p97_p1 = scmp.lt.s32.totalorder %s15_s7, %s15_s7 }
   0x4   :  { %p93_p0 = scmp.ne.s32.totalorder %s15_s7, %s92_s8  ;;  %p98_p2 = scmp.lt.s32.totalorder %s92_s8, %s92_s8 }
   0x6   :  { %p99_p3 = por %p98_p2, %p97_p1 }
   0x8   :  { %p100_p4 = pnand %p99_p3, %p93_p0 }
   0xa   :  { %103 = shalt.err (!%p100_p4)
}
   0xb   :  { %17 = dma.hbm_to_vmem [thread:$0]  %s146_s0, 256, %s15_s7, [#allocation3]  }
   0xc   :  { %124 = dma.done.wait [#allocation3], 256  }
   0xd   :  { %125 = vsyncadd [#allocation3], 4294967040  ;;  %v21_v0 = vld [vmem:[#allocation2] sm:$0xff]  ;;  %v22_v1 = vld [vmem:[#allocation2 + $0x8] sm:$0xff]  ;;  %s129_s0 = smov [#allocation5]  }
   0xe   :  { %v25_v2 = vand.u32 2147483647, %v21_v0  ;;  %v26_v3 = vand.u32 2147483647, %v22_v1  ;;  %v23_v20 = vmax.f32 %v21_v0, 0.0  ;;  %v24_v24 = vmax.f32 %v22_v1, 0.0 }
   0xf   :  { %vm53_vm2 = vcmp.gt.f32.partialorder %v21_v0, 20.0  ;;  %s65_s11 = sshll.u32 %s129_s0, 4  ;;  %vm54_vm3 = vcmp.gt.f32.partialorder %v22_v1, 20.0  ;;  %s66_s11 = int_to_ptr.vmem [resolvable:$true] %s65_s11 }
  0x10   :  { %v27_v4 = vsub.f32 0.0, %v25_v2  ;;  %v28_v5 = vsub.f32 0.0, %v26_v3  ;;  %s104_s12 = scalar_lea.vmem %s66_s11, 256  ;;  %p109_p6 = scmp.lt.s32.totalorder %s66_s11, %s66_s11 }
  0x11   :  { %p105_p5 = scmp.ne.s32.totalorder %s66_s11, %s104_s12  ;;  %p110_p7 = scmp.lt.s32.totalorder %s104_s12, %s104_s12 }
  0x12   :  { %v29_v6 = vmul.f32 1.442695, %v27_v4  ;;  %v31_v7 = vmul.f32 1.442695, %v28_v5 }
  0x13   :  { %p111_p8 = por %p110_p7, %p109_p6 }
  0x14   :  { %76 = vpow2.f32 %v29_v6 }
  0x15   :  { %78 = vpow2.f32 %v31_v7  ;;  %p112_p9 = pnand %p111_p8, %p105_p5 }
  0x21   :  { %v77_v8 = vpop.eup %76 }
  0x22   :  { %v79_v9 = vpop.eup %78  ;;  %v33_v10 = vadd.f32 1.0, %v77_v8  ;;  %v36_v12 = vmul.f32 -0.5, %v77_v8  ;;  %v39_v15 = vand.u32 2147483647, %v77_v8 }
  0x23   :  { %v42_v11 = vadd.f32 1.0, %v79_v9  ;;  %v45_v13 = vmul.f32 -0.5, %v79_v9  ;;  %v48_v17 = vand.u32 2147483647, %v79_v9 }
  0x24   :  { %80 = vlog2.f32 %v33_v10  ;;  %v37_v14 = vadd.f32 1.0, %v36_v12  ;;  %vm40_vm0 = vcmp.lt.f32.partialorder %v39_v15, 0.0004427343 }
  0x25   :  { %82 = vlog2.f32 %v42_v11  ;;  %v46_v16 = vadd.f32 1.0, %v45_v13  ;;  %vm49_vm1 = vcmp.lt.f32.partialorder %v48_v17, 0.0004427343 }
  0x26   :  { %v38_v18 = vmul.f32 %v77_v8, %v37_v14 }
  0x27   :  { %v47_v21 = vmul.f32 %v79_v9, %v46_v16 }
  0x31   :  { %v81_v19 = vpop.eup %80 }
  0x32   :  { %v83_v22 = vpop.eup %82  ;;  %v35_v23 = vmul.f32 0.6931472, %v81_v19 }
  0x33   :  { %v44_v25 = vmul.f32 0.6931472, %v83_v22 }
  0x34   :  { %v41_v26 = vsel %vm40_vm0, %v38_v18, %v35_v23 }
  0x35   :  { %v51_v27 = vadd.f32 %v41_v26, %v23_v20  ;;  %v50_v28 = vsel %vm49_vm1, %v47_v21, %v44_v25 }
  0x36   :  { %v52_v29 = vadd.f32 %v50_v28, %v24_v24 }
  0x37   :  { %v55_v30 = vsel %vm53_vm2, %v21_v0, %v51_v27 }
  0x38   :  { %57 = vst [vmem:[#allocation5] sm:$0xff] %v55_v30  ;;  %v56_v31 = vsel %vm54_vm3, %v22_v1, %v52_v29 }
  0x39   :  { %58 = vst [vmem:[#allocation5 + $0x8] sm:$0xff] %v56_v31 }
  0x3a   :  { %115 = shalt.err (!%p112_p9)
}
  0x3b   :  { %68 = dma.vmem_to_hbm [thread:$0]  %s66_s11, 256, %s147_s1, [#allocation4]  }
  0x3c   :  { %126 = dma.done.wait [#allocation4], 256  }
  0x3d   :  { %127 = vsyncadd [#allocation4], 4294967040 }
  0x3e   :  { %72 = vsyncpa [#allocation3], 1 }
  0x3f   :  { %73 = vsyncpa [#allocation4], 1 }

</bundles_post_ra>
